<compile_context>
chip_gen: v6e
topology: v6e:2x2x1
jax: 0.10.0
libtpu: 0.0.40
codegen_flags: <defaults>
</compile_context>

<pallas_src>
import jax
import jax.numpy as jnp
from jax.experimental import pallas as pl
from jax.experimental.pallas import tpu as pltpu

INPUT_SIZE = 64
HIDDEN_SIZE = 200
NUM_CLASSES = 230

HID_PAD = 256        # hidden dim padded to a lane multiple
CLS_PAD = 256        # class dim padded to a lane multiple

BLOCK_BATCH = 512    # max batch tile (rows per grid step)
NEG_INF = -1e30      # bias on padded class logits -> exp underflows to exactly 0


def _round_up(n, m):
    return (n + m - 1) // m * m


def mlp_kernel(x_ref, w1_ref, b1_ref, w2_ref, b2_ref, w3_ref, b3_ref, o_ref):
    # x arrives as f32 (tb, 64); cast to bf16 only for the MXU feed.
    x = x_ref[...].astype(jnp.bfloat16)

    # l1 + ReLU (f32 accumulate / elementwise, bf16 feed to the next MXU pass)
    h1 = jnp.dot(x, w1_ref[...], preferred_element_type=jnp.float32) + b1_ref[...]
    h1 = jnp.maximum(h1, 0.0).astype(jnp.bfloat16)

    # l2 + ReLU
    h2 = jnp.dot(h1, w2_ref[...], preferred_element_type=jnp.float32) + b2_ref[...]
    h2 = jnp.maximum(h2, 0.0).astype(jnp.bfloat16)

    # l3 (padded class lanes get -1e30 from the padded bias)
    logits = jnp.dot(h2, w3_ref[...], preferred_element_type=jnp.float32) + b3_ref[...]

    # numerically-stable softmax over the class (lane) dim, all f32, exact divide
    m = jnp.max(logits, axis=-1, keepdims=True)
    e = jnp.exp(logits - m)                      # padded lanes -> exactly 0
    denom = jnp.sum(e, axis=-1, keepdims=True)
    o_ref[...] = (e / denom).astype(o_ref.dtype)


def init_params(key):
    """nn.Linear-style init (uniform +/- 1/sqrt(fan_in)); weights stored (in, out)."""
    ks = jax.random.split(key, 6)

    def linear(kw, kb, fan_in, fan_out):
        bound = 1.0 / jnp.sqrt(fan_in)
        w = jax.random.uniform(kw, (fan_in, fan_out), jnp.float32, -bound, bound)
        b = jax.random.uniform(kb, (1, fan_out), jnp.float32, -bound, bound)
        return w, b

    w1, b1 = linear(ks[0], ks[1], INPUT_SIZE, HIDDEN_SIZE)
    w2, b2 = linear(ks[2], ks[3], HIDDEN_SIZE, HIDDEN_SIZE)
    w3, b3 = linear(ks[4], ks[5], HIDDEN_SIZE, NUM_CLASSES)
    return {"w1": w1, "b1": b1, "w2": w2, "b2": b2, "w3": w3, "b3": b3}


def pack_params(params):
    """Pad to lane-aligned shapes; weights bf16, biases f32.

    The contraction dim of the first matmul stays 64 (no padding).  Zero-padded hidden
    columns are exact (ReLU(0)=0); padded class logits are forced to -1e30 via b3 so the
    softmax columns [NUM_CLASSES:] are exactly 0.
    """
    w1 = jnp.zeros((INPUT_SIZE, HID_PAD), jnp.float32).at[:, :HIDDEN_SIZE].set(params["w1"])
    b1 = jnp.zeros((1, HID_PAD), jnp.float32).at[:, :HIDDEN_SIZE].set(params["b1"])
    w2 = jnp.zeros((HID_PAD, HID_PAD), jnp.float32).at[:HIDDEN_SIZE, :HIDDEN_SIZE].set(params["w2"])
    b2 = jnp.zeros((1, HID_PAD), jnp.float32).at[:, :HIDDEN_SIZE].set(params["b2"])
    w3 = jnp.zeros((HID_PAD, CLS_PAD), jnp.float32).at[:HIDDEN_SIZE, :NUM_CLASSES].set(params["w3"])
    b3 = jnp.full((1, CLS_PAD), NEG_INF, jnp.float32).at[:, :NUM_CLASSES].set(params["b3"])
    return {
        "w1": w1.astype(jnp.bfloat16), "b1": b1,
        "w2": w2.astype(jnp.bfloat16), "b2": b2,
        "w3": w3.astype(jnp.bfloat16), "b3": b3,
    }


@jax.jit
def neural_net_forward(x, packed):
    """Fused forward pass.

    x: (batch, INPUT_SIZE) float32.  packed: output of pack_params.
    Returns a (padded_batch, CLS_PAD) bf16 slab of softmax probabilities:
    rows [batch:] are padding and columns [NUM_CLASSES:] are exactly 0.  Consumers should
    index [:batch, :NUM_CLASSES] downstream (keeping the slice out of this function avoids
    an extra HBM copy pass over the kernel output).
    """
    batch = x.shape[0]
    # Batch tile: <= BLOCK_BATCH, multiple of 16 (bf16 sublane pack), and chosen so large
    # batches give >= 2 grid steps (the "parallel" axis then shards across 2 v7x TCs).
    tb = max(16, min(BLOCK_BATCH, _round_up(pl.cdiv(batch, 2), 16)))
    padded_batch = _round_up(batch, tb)
    if padded_batch != batch:
        x = jnp.pad(x, ((0, padded_batch - batch), (0, 0)))

    const = lambda i: (0, 0)  # weights/biases resident across all batch tiles

    flops = 2 * padded_batch * (INPUT_SIZE * HID_PAD + HID_PAD * HID_PAD + HID_PAD * CLS_PAD)
    weight_bytes = (2 * (INPUT_SIZE * HID_PAD + HID_PAD * HID_PAD + HID_PAD * CLS_PAD)
                    + 4 * (2 * HID_PAD + CLS_PAD))
    bytes_accessed = (padded_batch * INPUT_SIZE * 4      # x in (f32)
                      + weight_bytes                      # resident weights/biases
                      + padded_batch * CLS_PAD * 2)       # probs out (bf16)

    return pl.pallas_call(
        mlp_kernel,
        out_shape=jax.ShapeDtypeStruct((padded_batch, CLS_PAD), jnp.bfloat16),
        grid=(padded_batch // tb,),
        in_specs=[
            pl.BlockSpec((tb, INPUT_SIZE), lambda i: (i, 0)),   # x: pipelined over batch
            pl.BlockSpec((INPUT_SIZE, HID_PAD), const),         # w1 (K=64, no pad)
            pl.BlockSpec((1, HID_PAD), const),                  # b1
            pl.BlockSpec((HID_PAD, HID_PAD), const),            # w2
            pl.BlockSpec((1, HID_PAD), const),                  # b2
            pl.BlockSpec((HID_PAD, CLS_PAD), const),            # w3
            pl.BlockSpec((1, CLS_PAD), const),                  # b3
        ],
        out_specs=pl.BlockSpec((tb, CLS_PAD), lambda i: (i, 0)),
        compiler_params=pltpu.CompilerParams(
            dimension_semantics=("parallel",),                  # both TCs on v7x
        ),
        cost_estimate=pl.CostEstimate(
            flops=flops,
            transcendentals=padded_batch * CLS_PAD,
            bytes_accessed=bytes_accessed,
        ),
    )(x, packed["w1"], packed["b1"], packed["w2"], packed["b2"],
      packed["w3"], packed["b3"])


if __name__ == "__main__":
    key = jax.random.PRNGKey(0)
    pkey, xkey = jax.random.split(key)
    params = init_params(pkey)
    packed = pack_params(params)

    batch = 8
    x = jax.random.normal(xkey, (batch, INPUT_SIZE), jnp.float32)

    out_slab = neural_net_forward(x, packed)
    out_slab = jax.block_until_ready(out_slab)

    # Trim padding (test-only; hot-path consumers index the slab lazily downstream).
    out = out_slab[:batch, :NUM_CLASSES].astype(jnp.float32)
    assert out.shape == (batch, NUM_CLASSES)

    # padded class columns are (numerically) zero
    assert bool(jnp.all(jnp.abs(out_slab[:batch, NUM_CLASSES:].astype(jnp.float32)) <= 1e-6))

    # softmax rows sum to ~1 (tolerance covers bf16 output quantization)
    row_sums = jnp.sum(out, axis=-1)
    assert bool(jnp.all(jnp.abs(row_sums - 1.0) < 2e-2))
    assert bool(jnp.all(out >= 0.0))

    # cross-check against a pure-JAX f32 reference of the PyTorch forward
    def ref(x, p):
        h1 = jnp.maximum(x @ p["w1"] + p["b1"], 0.0)
        h2 = jnp.maximum(h1 @ p["w2"] + p["b2"], 0.0)
        return jax.nn.softmax(h2 @ p["w3"] + p["b3"], axis=-1)

    r = ref(x, params)
    assert bool(jnp.max(jnp.abs(out - r)) < 2e-2)

    print("KERNEL_OK")
</pallas_src>

<mosaic_0001>
module attributes {stable_mosaic.version = 11 : i64} {
  func.func @mlp_kernel(%arg0: i32, %arg1: memref<16x64xf32, #tpu.memory_space<vmem>>, %arg2: memref<64x256xbf16, #tpu.memory_space<vmem>>, %arg3: memref<1x256xf32, #tpu.memory_space<vmem>>, %arg4: memref<256x256xbf16, #tpu.memory_space<vmem>>, %arg5: memref<1x256xf32, #tpu.memory_space<vmem>>, %arg6: memref<256x256xbf16, #tpu.memory_space<vmem>>, %arg7: memref<1x256xf32, #tpu.memory_space<vmem>>, %arg8: memref<16x256xbf16, #tpu.memory_space<vmem>>) attributes {dimension_semantics = [#tpu.dimension_semantics<parallel>], iteration_bounds = array<i64: 1>, scalar_prefetch = 0 : i64, scratch_operands = 0 : i64, tpu.core_type = #tpu.core_type<tc>, window_params = [{transform_indices = @transform_0, window_bounds = array<i64: 16, 64>}, {pipeline_mode = #tpu.pipeline_mode<synchronous>, transform_indices = @transform_1, window_bounds = array<i64: 64, 256>}, {pipeline_mode = #tpu.pipeline_mode<synchronous>, transform_indices = @transform_2, window_bounds = array<i64: 1, 256>}, {pipeline_mode = #tpu.pipeline_mode<synchronous>, transform_indices = @transform_3, window_bounds = array<i64: 256, 256>}, {pipeline_mode = #tpu.pipeline_mode<synchronous>, transform_indices = @transform_4, window_bounds = array<i64: 1, 256>}, {pipeline_mode = #tpu.pipeline_mode<synchronous>, transform_indices = @transform_5, window_bounds = array<i64: 256, 256>}, {pipeline_mode = #tpu.pipeline_mode<synchronous>, transform_indices = @transform_6, window_bounds = array<i64: 1, 256>}, {transform_indices = @transform_7, window_bounds = array<i64: 16, 256>}]} {
    %c0 = arith.constant 0 : index
    %c0_0 = arith.constant 0 : index
    %0 = vector.load %arg1[%c0, %c0_0] : memref<16x64xf32, #tpu.memory_space<vmem>>, vector<16x64xf32>
    %1 = arith.truncf %0 : vector<16x64xf32> to vector<16x64xbf16>
    %c0_1 = arith.constant 0 : index
    %c0_2 = arith.constant 0 : index
    %2 = vector.load %arg2[%c0_1, %c0_2] : memref<64x256xbf16, #tpu.memory_space<vmem>>, vector<64x256xbf16>
    %cst = arith.constant dense<0.000000e+00> : vector<16x256xf32>
    %3 = tpu.matmul %1, %2, %cst {dimension_numbers = #tpu.dot_dimension_numbers<[1], [0], [0], [1], [0, 0, 1, 1], [], []>} : vector<16x64xbf16>, vector<64x256xbf16>, vector<16x256xf32> -> vector<16x256xf32>
    %c0_3 = arith.constant 0 : index
    %c0_4 = arith.constant 0 : index
    %4 = vector.load %arg3[%c0_3, %c0_4] : memref<1x256xf32, #tpu.memory_space<vmem>>, vector<1x256xf32>
    %5 = vector.broadcast %4 : vector<1x256xf32> to vector<16x256xf32>
    %6 = arith.addf %3, %5 : vector<16x256xf32>
    %cst_5 = arith.constant 0.000000e+00 : f32
    %7 = vector.broadcast %cst_5 : f32 to vector<16x256xf32>
    %8 = arith.maximumf %6, %7 : vector<16x256xf32>
    %9 = arith.truncf %8 : vector<16x256xf32> to vector<16x256xbf16>
    %c0_6 = arith.constant 0 : index
    %c0_7 = arith.constant 0 : index
    %10 = vector.load %arg4[%c0_6, %c0_7] : memref<256x256xbf16, #tpu.memory_space<vmem>>, vector<256x256xbf16>
    %cst_8 = arith.constant dense<0.000000e+00> : vector<16x256xf32>
    %11 = tpu.matmul %9, %10, %cst_8 {dimension_numbers = #tpu.dot_dimension_numbers<[1], [0], [0], [1], [0, 0, 1, 1], [], []>} : vector<16x256xbf16>, vector<256x256xbf16>, vector<16x256xf32> -> vector<16x256xf32>
    %c0_9 = arith.constant 0 : index
    %c0_10 = arith.constant 0 : index
    %12 = vector.load %arg5[%c0_9, %c0_10] : memref<1x256xf32, #tpu.memory_space<vmem>>, vector<1x256xf32>
    %13 = vector.broadcast %12 : vector<1x256xf32> to vector<16x256xf32>
    %14 = arith.addf %11, %13 : vector<16x256xf32>
    %cst_11 = arith.constant 0.000000e+00 : f32
    %15 = vector.broadcast %cst_11 : f32 to vector<16x256xf32>
    %16 = arith.maximumf %14, %15 : vector<16x256xf32>
    %17 = arith.truncf %16 : vector<16x256xf32> to vector<16x256xbf16>
    %c0_12 = arith.constant 0 : index
    %c0_13 = arith.constant 0 : index
    %18 = vector.load %arg6[%c0_12, %c0_13] : memref<256x256xbf16, #tpu.memory_space<vmem>>, vector<256x256xbf16>
    %cst_14 = arith.constant dense<0.000000e+00> : vector<16x256xf32>
    %19 = tpu.matmul %17, %18, %cst_14 {dimension_numbers = #tpu.dot_dimension_numbers<[1], [0], [0], [1], [0, 0, 1, 1], [], []>} : vector<16x256xbf16>, vector<256x256xbf16>, vector<16x256xf32> -> vector<16x256xf32>
    %c0_15 = arith.constant 0 : index
    %c0_16 = arith.constant 0 : index
    %20 = vector.load %arg7[%c0_15, %c0_16] : memref<1x256xf32, #tpu.memory_space<vmem>>, vector<1x256xf32>
    %21 = vector.broadcast %20 : vector<1x256xf32> to vector<16x256xf32>
    %22 = arith.addf %19, %21 : vector<16x256xf32>
    %cst_17 = arith.constant dense<0xFF800000> : vector<16xf32>
    %23 = vector.multi_reduction <maximumf>, %22, %cst_17 [1] : vector<16x256xf32> to vector<16xf32>
    %24 = vector.shape_cast %23 : vector<16xf32> to vector<16x1xf32>
    %25 = vector.broadcast %24 : vector<16x1xf32> to vector<16x256xf32>
    %26 = arith.subf %22, %25 : vector<16x256xf32>
    %27 = math.exp %26 : vector<16x256xf32>
    %cst_18 = arith.constant dense<0.000000e+00> : vector<16xf32>
    %28 = vector.multi_reduction <add>, %27, %cst_18 [1] : vector<16x256xf32> to vector<16xf32>
    %29 = vector.shape_cast %28 : vector<16xf32> to vector<16x1xf32>
    %30 = vector.broadcast %29 : vector<16x1xf32> to vector<16x256xf32>
    %31 = arith.divf %27, %30 : vector<16x256xf32>
    %32 = arith.truncf %31 : vector<16x256xf32> to vector<16x256xbf16>
    %c0_19 = arith.constant 0 : index
    %c0_20 = arith.constant 0 : index
    %33 = vector.load %arg8[%c0_19, %c0_20] : memref<16x256xbf16, #tpu.memory_space<vmem>>, vector<16x256xbf16>
    tpu.vector_store %arg8[%c0_19, %c0_20], %32 {strides = array<i32>} : memref<16x256xbf16, #tpu.memory_space<vmem>>, vector<16x256xbf16>,
    return
  }
  func.func @transform_0(%arg0: i32) -> (i32, i32) {
    %c0_i32 = arith.constant 0 : i32
    %c0_i32_0 = arith.constant 0 : i32
    return %arg0, %c0_i32 : i32, i32
  }
  func.func @transform_1(%arg0: i32) -> (i32, i32) {
    %c0_i32 = arith.constant 0 : i32
    %c0_i32_0 = arith.constant 0 : i32
    %c0_i32_1 = arith.constant 0 : i32
    return %c0_i32, %c0_i32_0 : i32, i32
  }
  func.func @transform_2(%arg0: i32) -> (i32, i32) {
    %c0_i32 = arith.constant 0 : i32
    %c0_i32_0 = arith.constant 0 : i32
    %c0_i32_1 = arith.constant 0 : i32
    return %c0_i32, %c0_i32_0 : i32, i32
  }
  func.func @transform_3(%arg0: i32) -> (i32, i32) {
    %c0_i32 = arith.constant 0 : i32
    %c0_i32_0 = arith.constant 0 : i32
    %c0_i32_1 = arith.constant 0 : i32
    return %c0_i32, %c0_i32_0 : i32, i32
  }
  func.func @transform_4(%arg0: i32) -> (i32, i32) {
    %c0_i32 = arith.constant 0 : i32
    %c0_i32_0 = arith.constant 0 : i32
    %c0_i32_1 = arith.constant 0 : i32
    return %c0_i32, %c0_i32_0 : i32, i32
  }
  func.func @transform_5(%arg0: i32) -> (i32, i32) {
    %c0_i32 = arith.constant 0 : i32
    %c0_i32_0 = arith.constant 0 : i32
    %c0_i32_1 = arith.constant 0 : i32
    return %c0_i32, %c0_i32_0 : i32, i32
  }
  func.func @transform_6(%arg0: i32) -> (i32, i32) {
    %c0_i32 = arith.constant 0 : i32
    %c0_i32_0 = arith.constant 0 : i32
    %c0_i32_1 = arith.constant 0 : i32
    return %c0_i32, %c0_i32_0 : i32, i32
  }
  func.func @transform_7(%arg0: i32) -> (i32, i32) {
    %c0_i32 = arith.constant 0 : i32
    %c0_i32_0 = arith.constant 0 : i32
    return %arg0, %c0_i32 : i32, i32
  }
}

</mosaic_0001>

<bundles_post_ra>
// kernel: neural_net_forward.1
= control target key start
LH: loop header
LB: loop body
LE: loop exit
PB: predicated region body
PF: predicated region fallthrough
CT: control target
= control target key end

     0   :  { %12 = vsyncpa [#allocation3], 0  ;;  %s1123_s0 = inlined_call_operand.vmem [shape: f32[16,64], index: 0, kind: input, shape index: {}]   ;;  %s1124_s1 = inlined_call_operand.hbm [shape: bf16[64,256], index: 1, kind: input, shape index: {}]   ;;  %s1125_s2 = inlined_call_operand.vmem [shape: f32[1,256], index: 2, kind: input, shape index: {}]   ;;  %s1126_s3 = inlined_call_operand.hbm [shape: bf16[256,256], index: 3, kind: input, shape index: {}]   ;;  %s1127_s4 = inlined_call_operand.vmem [shape: f32[1,256], index: 4, kind: input, shape index: {}]   ;;  %s1128_s5 = inlined_call_operand.hbm [shape: bf16[256,256], index: 5, kind: input, shape index: {}]   ;;  %s1129_s6 = inlined_call_operand.vmem [shape: f32[1,256], index: 6, kind: input, shape index: {}]   ;;  %s1130_s7 = inlined_call_operand.hbm [shape: bf16[16,256], index: 7, kind: output, shape index: {}]  }
   0x1   :  { %13 = vsyncpa [#allocation6], 0 }
   0x2   :  { %14 = vsyncpa [#allocation4], 0  ;;  %s1037_s24 = smov [#allocation5]   ;;  %s1038_s26 = smov [#allocation2]  }
   0x3   :  { %s36_s25 = sshll.u32 %s1037_s24, 4  ;;  %s22_s27 = sshll.u32 %s1038_s26, 4  ;;  %s37_s25 = int_to_ptr.vmem [resolvable:$true] %s36_s25  ;;  %s23_s27 = int_to_ptr.vmem [resolvable:$true] %s22_s27 }
   0x4   :  { %s959_s28 = scalar_lea.vmem %s37_s25, 4096  ;;  %p964_p1 = scmp.lt.s32.totalorder %s37_s25, %s37_s25 }
   0x5   :  { %p960_p0 = scmp.ne.s32.totalorder %s37_s25, %s959_s28  ;;  %p965_p2 = scmp.lt.s32.totalorder %s959_s28, %s959_s28 }
   0x7   :  { %p966_p3 = por %p965_p2, %p964_p1 }
   0x9   :  { %p967_p4 = pnand %p966_p3, %p960_p0 }
   0xb   :  { %970 = shalt.err (!%p967_p4)
}
   0xc   :  { %s1039_s29 = smov 128   ;;  %s1040_s30 = smov 8  }
   0xd   :  { %42 = dma.hbm_to_vmem [thread:$0]  %s1126_s3, 4096, %s37_s25, [#allocation6], %s1039_s29, %s1039_s29, %s1040_s30  }
   0xe   :  { %s979_s10 = scalar_lea.vmem %s23_s27, 1024  ;;  %p984_p6 = scmp.lt.s32.totalorder %s23_s27, %s23_s27 }
   0xf   :  { %p980_p5 = scmp.ne.s32.totalorder %s23_s27, %s979_s10  ;;  %p985_p7 = scmp.lt.s32.totalorder %s979_s10, %s979_s10 }
  0x11   :  { %p986_p8 = por %p985_p7, %p984_p6 }
  0x13   :  { %p987_p9 = pnand %p986_p8, %p980_p5 }
  0x15   :  { %990 = shalt.err (!%p987_p9)
}
  0x16   :  { %28 = dma.hbm_to_vmem [thread:$0]  %s1124_s1, 1024, %s23_s27, [#allocation3], %s1039_s29, %s1039_s29, %s1040_s30  }
  0x17   :  { %s1041_s13 = smov [#allocation7]  }
  0x18   :  { %s50_s14 = sshll.u32 %s1041_s13, 4  ;;  %s51_s14 = int_to_ptr.vmem [resolvable:$true] %s50_s14 }
  0x19   :  { %s999_s15 = scalar_lea.vmem %s51_s14, 4096  ;;  %p1004_p11 = scmp.lt.s32.totalorder %s51_s14, %s51_s14 }
  0x1a   :  { %p1000_p10 = scmp.ne.s32.totalorder %s51_s14, %s999_s15  ;;  %p1005_p12 = scmp.lt.s32.totalorder %s999_s15, %s999_s15 }
  0x1c   :  { %p1006_p13 = por %p1005_p12, %p1004_p11 }
  0x1e   :  { %p1007_p0 = pnand %p1006_p13, %p1000_p10 }
  0x20   :  { %1010 = shalt.err (!%p1007_p0)
}
  0x21   :  { %56 = dma.hbm_to_vmem [thread:$0]  %s1128_s5, 4096, %s51_s14, [#allocation6], %s1039_s29, %s1039_s29, %s1040_s30  }
  0x22   :  { %1031 = dma.done.wait [#allocation3], 1024  }
  0x23   :  { %1032 = vsyncadd [#allocation3], 4294966272 }
  0x24   :  { %1033 = dma.done.wait [#allocation6], 8192  }
  0x25   :  { %1034 = vsyncadd [#allocation6], 4294959104  ;;  %v1042_v0 = vmov 0   ;;  %v831_v1 = vld [vmem:[#allocation2 + $0x34] ss:$8 sps:$4 sm:$0xff]   ;;  %v69_v12 = vld [vmem:[%s1123_s0] sm:$0xff] }
  0x26   :  { %168 = vmatprep.mubr.bf16.mxu0 %v1042_v0  ;;  %v833_v2 = vld [vmem:[#allocation2 + $0x30] ss:$8 sps:$4 sm:$0xff]   ;;  %144 = vmatprep.subr.bf16.mxu0 %v831_v1  ;;  %v834_v3 = vld [vmem:[#allocation2 + $0x24] ss:$8 sps:$4 sm:$0xff]   ;;  %v836_v4 = vld [vmem:[#allocation2 + $0x20] ss:$8 sps:$4 sm:$0xff]  }
  0x27   :  { %145 = vmatpush1.bf16.msra.mxu0 %v833_v2  ;;  %v837_v5 = vld [vmem:[#allocation2 + $0x14] ss:$8 sps:$4 sm:$0xff]   ;;  %v839_v6 = vld [vmem:[#allocation2 + $0x10] ss:$8 sps:$4 sm:$0xff]   ;;  %v840_v9 = vld [vmem:[#allocation2 + $0x4] ss:$8 sps:$4 sm:$0xff]  }
  0x28   :  { %146 = vmatprep.subr.bf16.mxu0 %v834_v3  ;;  %v843_v7 = vld [vmem:[#allocation5 + $0x74] ss:$8 sps:$4 sm:$0xff]   ;;  %v845_v8 = vld [vmem:[#allocation5 + $0x70] ss:$8 sps:$4 sm:$0xff]   ;;  %v846_v10 = vld [vmem:[#allocation5 + $0x64] ss:$8 sps:$4 sm:$0xff]  }
  0x29   :  { %389 = vmatprep.subr.bf16.mxu1 %v843_v7  ;;  %v842_v11 = vld [vmem:[#allocation2] ss:$8 sps:$4 sm:$0xff]   ;;  %v849_v14 = vld [vmem:[#allocation5 + $0x54] ss:$8 sps:$4 sm:$0xff]   ;;  %v851_v16 = vld [vmem:[#allocation5 + $0x50] ss:$8 sps:$4 sm:$0xff]  }
  0x2a   :  { %390 = vmatpush1.bf16.msra.mxu1 %v845_v8  ;;  %v848_v13 = vld [vmem:[#allocation5 + $0x60] ss:$8 sps:$4 sm:$0xff]   ;;  %v852_v18 = vld [vmem:[#allocation5 + $0x44] ss:$8 sps:$4 sm:$0xff]   ;;  %vm132_vm0 = vcmask 523264  }
  0x2b   :  { %147 = vmatpush1.bf16.msra.mxu0 %v836_v4  ;;  %391 = vmatprep.subr.bf16.mxu1 %v846_v10  ;;  %v70_v15 = vld [vmem:[%s1123_s0 + $0x8] sm:$0xff]  ;;  %v855_v20 = vld [vmem:[#allocation5 + $0x34] ss:$8 sps:$4 sm:$0xff]   ;;  %v857_v21 = vld [vmem:[#allocation5 + $0x30] ss:$8 sps:$4 sm:$0xff]  }
  0x2c   :  { %148 = vmatprep.subr.bf16.mxu0 %v837_v5  ;;  %v71_v17 = vpack.c.bf16 %v70_v15, %v69_v12  ;;  %v854_v19 = vld [vmem:[#allocation5 + $0x40] ss:$8 sps:$4 sm:$0xff]   ;;  %v858_v22 = vld [vmem:[#allocation5 + $0x24] ss:$8 sps:$4 sm:$0xff]   ;;  %v861_v24 = vld [vmem:[#allocation5 + $0x14] ss:$8 sps:$4 sm:$0xff]  }
  0x2d   :  { %v860_v23 = vld [vmem:[#allocation5 + $0x20] ss:$8 sps:$4 sm:$0xff]   ;;  %v863_v25 = vld [vmem:[#allocation5 + $0x10] ss:$8 sps:$4 sm:$0xff]   ;;  %v864_v26 = vld [vmem:[#allocation5 + $0x4] ss:$8 sps:$4 sm:$0xff]  }
  0x2e   :  { %392 = vmatpush1.bf16.msra.mxu1 %v848_v13  ;;  %v866_v27 = vld [vmem:[#allocation5] ss:$8 sps:$4 sm:$0xff]   ;;  %v867_v28 = vld [vmem:[#allocation5 + $0xf4] ss:$8 sps:$4 sm:$0xff]   ;;  %v869_v29 = vld [vmem:[#allocation5 + $0xf0] ss:$8 sps:$4 sm:$0xff]  }
  0x2f   :  { %149 = vmatpush1.bf16.msra.mxu0 %v839_v6  ;;  %393 = vmatprep.subr.bf16.mxu1 %v849_v14  ;;  %v870_v30 = vld [vmem:[#allocation5 + $0xe4] ss:$8 sps:$4 sm:$0xff]   ;;  %v872_v31 = vld [vmem:[#allocation5 + $0xe0] ss:$8 sps:$4 sm:$0xff]   ;;  %v873_v32 = vld [vmem:[#allocation5 + $0xd4] ss:$8 sps:$4 sm:$0xff]   ;;  %v82_v6 = vlaneseq }
  0x30   :  { %150 = vmatprep.subr.bf16.mxu0 %v840_v9  ;;  %v875_v33 = vld [vmem:[#allocation5 + $0xd0] ss:$8 sps:$4 sm:$0xff]   ;;  %v876_v34 = vld [vmem:[#allocation5 + $0xc4] ss:$8 sps:$4 sm:$0xff]   ;;  %v878_v35 = vld [vmem:[#allocation5 + $0xc0] ss:$8 sps:$4 sm:$0xff]  }
  0x31   :  { %v879_v36 = vld [vmem:[#allocation5 + $0xb4] ss:$8 sps:$4 sm:$0xff]   ;;  %v881_v37 = vld [vmem:[#allocation5 + $0xb0] ss:$8 sps:$4 sm:$0xff]   ;;  %v882_v38 = vld [vmem:[#allocation5 + $0xa4] ss:$8 sps:$4 sm:$0xff]  }
  0x32   :  { %394 = vmatpush1.bf16.msra.mxu1 %v851_v16  ;;  %v884_v39 = vld [vmem:[#allocation5 + $0xa0] ss:$8 sps:$4 sm:$0xff]   ;;  %v885_v40 = vld [vmem:[#allocation5 + $0x94] ss:$8 sps:$4 sm:$0xff]   ;;  %v887_v41 = vld [vmem:[#allocation5 + $0x90] ss:$8 sps:$4 sm:$0xff]  }
  0x33   :  { %151 = vmatpush1.bf16.msra.mxu0 %v842_v11  ;;  %395 = vmatprep.subr.bf16.mxu1 %v852_v18  ;;  %v888_v42 = vld [vmem:[#allocation5 + $0x84] ss:$8 sps:$4 sm:$0xff]   ;;  %v890_v43 = vld [vmem:[#allocation5 + $0x80] ss:$8 sps:$4 sm:$0xff]   ;;  %v891_v44 = vld [vmem:[#allocation7 + $0x70] ss:$8 sps:$4 sm:$0xff]  }
  0x34   :  { %v893_v45 = vld [vmem:[#allocation7 + $0x74] ss:$8 sps:$4 sm:$0xff]   ;;  %v896_v46 = vld [vmem:[#allocation7 + $0x64] ss:$8 sps:$4 sm:$0xff]   ;;  %v894_v47 = vld [vmem:[#allocation7 + $0x60] ss:$8 sps:$4 sm:$0xff]  }
  0x35   :  { %642 = vmatprep.subr.bf16.mxu0 %v893_v45  ;;  %v899_v48 = vld [vmem:[#allocation7 + $0x54] ss:$8 sps:$4 sm:$0xff]   ;;  %v897_v49 = vld [vmem:[#allocation7 + $0x50] ss:$8 sps:$4 sm:$0xff]   ;;  %v902_v50 = vld [vmem:[#allocation7 + $0x44] ss:$8 sps:$4 sm:$0xff]  }
  0x36   :  { %755 = vmatmul.mubr.msk.bf16.vlgmr.msra.gmra.mxu0 %vm132_vm0, %v71_v17  ;;  %396 = vmatpush1.bf16.msra.mxu1 %v854_v19  ;;  %v900_v51 = vld [vmem:[#allocation7 + $0x40] ss:$8 sps:$4 sm:$0xff]   ;;  %v905_v52 = vld [vmem:[#allocation7 + $0x34] ss:$8 sps:$4 sm:$0xff]   ;;  %v903_v53 = vld [vmem:[#allocation7 + $0x30] ss:$8 sps:$4 sm:$0xff]  }
  0x37   :  { %397 = vmatprep.subr.bf16.mxu1 %v855_v20  ;;  %643 = vmatpush1.bf16.msra.mxu0 %v891_v44  ;;  %v908_v54 = vld [vmem:[#allocation7 + $0x24] ss:$8 sps:$4 sm:$0xff]   ;;  %v906_v55 = vld [vmem:[#allocation7 + $0x20] ss:$8 sps:$4 sm:$0xff]   ;;  %v911_v56 = vld [vmem:[#allocation7 + $0x14] ss:$8 sps:$4 sm:$0xff]  }
  0x38   :  { %644 = vmatprep.subr.bf16.mxu0 %v896_v46  ;;  %v909_v57 = vld [vmem:[#allocation7 + $0x10] ss:$8 sps:$4 sm:$0xff]   ;;  %v914_v58 = vld [vmem:[#allocation7 + $0x4] ss:$8 sps:$4 sm:$0xff]   ;;  %v912_v59 = vld [vmem:[#allocation7] ss:$8 sps:$4 sm:$0xff]  }
  0x39   :  { %v917_v60 = vld [vmem:[#allocation7 + $0xf4] ss:$8 sps:$4 sm:$0xff]   ;;  %v915_v61 = vld [vmem:[#allocation7 + $0xf0] ss:$8 sps:$4 sm:$0xff]   ;;  %v920_v62 = vld [vmem:[#allocation7 + $0xe4] ss:$8 sps:$4 sm:$0xff]  }
  0x3a   :  { %398 = vmatpush1.bf16.msra.mxu1 %v857_v21  ;;  %v918_v63 = vld [vmem:[#allocation7 + $0xe0] ss:$8 sps:$4 sm:$0xff]   ;;  %v923_v0 = vld [vmem:[#allocation7 + $0xd4] ss:$8 sps:$4 sm:$0xff]   ;;  %v921_v1 = vld [vmem:[#allocation7 + $0xd0] ss:$8 sps:$4 sm:$0xff]  }
  0x3b   :  { %399 = vmatprep.subr.bf16.mxu1 %v858_v22  ;;  %645 = vmatpush1.bf16.msra.mxu0 %v894_v47  ;;  %v926_v2 = vld [vmem:[#allocation7 + $0xc4] ss:$8 sps:$4 sm:$0xff]   ;;  %v924_v3 = vld [vmem:[#allocation7 + $0xc0] ss:$8 sps:$4 sm:$0xff]   ;;  %v929_v4 = vld [vmem:[#allocation7 + $0xb4] ss:$8 sps:$4 sm:$0xff]  }
  0x3c   :  { %646 = vmatprep.subr.bf16.mxu0 %v899_v48  ;;  %v927_v5 = vld [vmem:[#allocation7 + $0xb0] ss:$8 sps:$4 sm:$0xff]   ;;  %v83_v7 = vshrl.u32 %v82_v6, 7  ;;  %v80_v10 = vld [vmem:[%s1125_s2] sm:$0x3] }
  0x3e   :  { %400 = vmatpush1.bf16.msra.mxu1 %v860_v23  ;;  %v88_v8 = vsub.s32 1, %v83_v7  ;;  %v84_v9 = vsub.s32 0, %v83_v7 }
  0x3f   :  { %401 = vmatprep.subr.bf16.mxu1 %v861_v24  ;;  %647 = vmatpush1.bf16.msra.mxu0 %v897_v49 }
  0x40   :  { %648 = vmatprep.subr.bf16.mxu0 %v902_v50  ;;  %v89_v12 = vrot.slane %v80_v10, %v88_v8  ;;  %v85_v13 = vrot.slane %v80_v10, %v84_v9  ;;  %v470_v50 = vld [vmem:[%s1129_s6] sm:$0x3]  ;;  %s1043_s6 = smov [#allocation8]  }
  0x41   :  { %s734_s22 = sshll.u32 %s1043_s6, 4  ;;  %s735_s22 = int_to_ptr.vmem [resolvable:$true] %s734_s22 }
  0x42   :  { %402 = vmatpush1.bf16.msra.mxu1 %v863_v25  ;;  %s1011_s23 = scalar_lea.vmem %s735_s22, 256  ;;  %p1016_p2 = scmp.lt.s32.totalorder %s735_s22, %s735_s22 }
  0x43   :  { %403 = vmatprep.subr.bf16.mxu1 %v864_v26  ;;  %649 = vmatpush1.bf16.msra.mxu0 %v900_v51  ;;  %v475_v51 = vrot.slane %v470_v50, %v84_v9  ;;  %p1012_p1 = scmp.ne.s32.totalorder %s735_s22, %s1011_s23  ;;  %p1017_p3 = scmp.lt.s32.totalorder %s1011_s23, %s1011_s23 }
  0x44   :  { %650 = vmatprep.subr.bf16.mxu0 %v905_v52  ;;  %v479_v52 = vrot.slane %v470_v50, %v88_v8 }
  0x45   :  { %p1018_p4 = por %p1017_p3, %p1016_p2 }
  0x46   :  { %404 = vmatpush1.bf16.msra.mxu1 %v866_v27  ;;  %v932_v27 = vld [vmem:[#allocation7 + $0xa4] ss:$8 sps:$4 sm:$0xff]  }
  0x47   :  { %405 = vmatprep.subr.bf16.mxu1 %v867_v28  ;;  %651 = vmatpush1.bf16.msra.mxu0 %v903_v53  ;;  %v930_v28 = vld [vmem:[#allocation7 + $0xa0] ss:$8 sps:$4 sm:$0xff]   ;;  %p1019_p5 = pnand %p1018_p4, %p1012_p1 }
  0x48   :  { %652 = vmatprep.subr.bf16.mxu0 %v908_v54 }
  0x4a   :  { %406 = vmatpush2.bf16.msra.mxu1 %v869_v29  ;;  %v935_v29 = vld [vmem:[#allocation7 + $0x94] ss:$8 sps:$4 sm:$0xff]  }
  0x4b   :  { %407 = vmatprep.subr.bf16.mxu1 %v870_v30  ;;  %653 = vmatpush1.bf16.msra.mxu0 %v906_v55  ;;  %v933_v30 = vld [vmem:[#allocation7 + $0x90] ss:$8 sps:$4 sm:$0xff]  }
  0x4c   :  { %654 = vmatprep.subr.bf16.mxu0 %v911_v56 }
  0x4e   :  { %408 = vmatpush2.bf16.msra.mxu1 %v872_v31  ;;  %v938_v31 = vld [vmem:[#allocation7 + $0x84] ss:$8 sps:$4 sm:$0xff]  }
  0x4f   :  { %409 = vmatprep.subr.bf16.mxu1 %v873_v32  ;;  %655 = vmatpush1.bf16.msra.mxu0 %v909_v57  ;;  %v936_v32 = vld [vmem:[#allocation7 + $0x80] ss:$8 sps:$4 sm:$0xff]  }
  0x50   :  { %656 = vmatprep.subr.bf16.mxu0 %v914_v58 }
  0x52   :  { %410 = vmatpush2.bf16.msra.mxu1 %v875_v33  ;;  %v217_v33 = vld [vmem:[%s1127_s4] sm:$0x3] }
  0x53   :  { %411 = vmatprep.subr.bf16.mxu1 %v876_v34  ;;  %657 = vmatpush1.bf16.msra.mxu0 %v912_v59 }
  0x54   :  { %658 = vmatprep.subr.bf16.mxu0 %v917_v60 }
  0x56   :  { %412 = vmatpush2.bf16.msra.mxu1 %v878_v35  ;;  %v226_v35 = vrot.slane %v217_v33, %v88_v8 }
  0x57   :  { %413 = vmatprep.subr.bf16.mxu1 %v879_v36  ;;  %659 = vmatpush2.bf16.msra.mxu0 %v915_v61  ;;  %v222_v36 = vrot.slane %v217_v33, %v84_v9 }
  0x58   :  { %660 = vmatprep.subr.bf16.mxu0 %v920_v62 }
  0x5a   :  { %414 = vmatpush2.bf16.msra.mxu1 %v881_v37 }
  0x5b   :  { %415 = vmatprep.subr.bf16.mxu1 %v882_v38  ;;  %661 = vmatpush2.bf16.msra.mxu0 %v918_v63 }
  0x5c   :  { %662 = vmatprep.subr.bf16.mxu0 %v923_v0 }
  0x5e   :  { %416 = vmatpush2.bf16.msra.mxu1 %v884_v39 }
  0x5f   :  { %417 = vmatprep.subr.bf16.mxu1 %v885_v40  ;;  %663 = vmatpush2.bf16.msra.mxu0 %v921_v1 }
  0x60   :  { %664 = vmatprep.subr.bf16.mxu0 %v926_v2 }
  0x62   :  { %418 = vmatpush2.bf16.msra.mxu1 %v887_v41 }
  0x63   :  { %419 = vmatprep.subr.bf16.mxu1 %v888_v42  ;;  %665 = vmatpush2.bf16.msra.mxu0 %v924_v3 }
  0x64   :  { %666 = vmatprep.subr.bf16.mxu0 %v929_v4 }
  0x66   :  { %420 = vmatpush2.bf16.msra.mxu1 %v890_v43 }
  0x67   :  { %667 = vmatpush2.bf16.msra.mxu0 %v927_v5 }
  0x68   :  { %668 = vmatprep.subr.bf16.mxu0 %v932_v27 }
  0x6b   :  { %669 = vmatpush2.bf16.msra.mxu0 %v930_v28 }
  0x6c   :  { %670 = vmatprep.subr.bf16.mxu0 %v935_v29 }
  0x6f   :  { %671 = vmatpush2.bf16.msra.mxu0 %v933_v30 }
  0x70   :  { %672 = vmatprep.subr.bf16.mxu0 %v938_v31 }
  0x73   :  { %673 = vmatpush2.bf16.msra.mxu0 %v936_v32 }
  0xf6   :  { %v170_v11 = vpop.f32.mrf.mxu0 }
  0xf7   :  { %v171_v18 = vadd.f32 %v170_v11, %v85_v13 }
  0xf8   :  { %v172_v14 = vpop.f32.mrf.mxu0 }
  0xf9   :  { %v173_v16 = vadd.f32 %v172_v14, %v89_v12  ;;  %v179_v24 = vmax.f32 %v171_v18, 0.0 }
  0xfa   :  { %v174_v15 = vpop.f32.mrf.mxu0 }
  0xfb   :  { %v175_v17 = vadd.f32 %v174_v15, %v85_v13  ;;  %v180_v22 = vmax.f32 %v173_v16, 0.0 }
  0xfc   :  { %v176_v19 = vpop.f32.mrf.mxu0 }
  0xfd   :  { %v177_v20 = vadd.f32 %v176_v19, %v89_v12  ;;  %v181_v21 = vmax.f32 %v175_v17, 0.0 }
  0xff   :  { %v182_v23 = vmax.f32 %v177_v20, 0.0  ;;  %v183_v26 = vpack.c.bf16 %v181_v21, %v179_v24 }
 0x101   :  { %v184_v25 = vpack.c.bf16 %v182_v23, %v180_v22 }
 0x103   :  { %421 = vmatprep.mubr.bf16.mxu1 %v184_v25 }
 0x104   :  { %422 = vmatmul.mubr.bf16.vlgmr.msra.gmra.mxu1 %v183_v26 }
 0x1c4   :  { %v423_v34 = vpop.f32.mrf.mxu1 }
 0x1c5   :  { %v424_v41 = vadd.f32 %v423_v34, %v222_v36 }
 0x1c6   :  { %v425_v37 = vpop.f32.mrf.mxu1 }
 0x1c7   :  { %v426_v39 = vadd.f32 %v425_v37, %v226_v35  ;;  %v432_v47 = vmax.f32 %v424_v41, 0.0 }
 0x1c8   :  { %v427_v38 = vpop.f32.mrf.mxu1 }
 0x1c9   :  { %v428_v40 = vadd.f32 %v427_v38, %v222_v36  ;;  %v433_v45 = vmax.f32 %v426_v39, 0.0 }
 0x1ca   :  { %v429_v42 = vpop.f32.mrf.mxu1 }
 0x1cb   :  { %v430_v43 = vadd.f32 %v429_v42, %v226_v35  ;;  %v434_v44 = vmax.f32 %v428_v40, 0.0 }
 0x1cd   :  { %v435_v46 = vmax.f32 %v430_v43, 0.0  ;;  %v436_v49 = vpack.c.bf16 %v434_v44, %v432_v47 }
 0x1cf   :  { %v437_v48 = vpack.c.bf16 %v435_v46, %v433_v45 }
 0x1d1   :  { %674 = vmatprep.mubr.bf16.mxu0 %v437_v48 }
 0x1d2   :  { %675 = vmatmul.mubr.bf16.vlgmr.msra.gmra.mxu0 %v436_v49 }
 0x292   :  { %v676_v53 = vpop.f32.mrf.mxu0 }
 0x293   :  { %v677_v55 = vadd.f32 %v676_v53, %v475_v51 }
 0x294   :  { %v678_v54 = vpop.f32.mrf.mxu0 }
 0x295   :  { %v679_v56 = vadd.f32 %v678_v54, %v479_v52 }
 0x296   :  { %v680_v57 = vpop.f32.mrf.mxu0 }
 0x297   :  { %v685_v58 = vmax.f32 %v677_v55, %v679_v56  ;;  %v681_v60 = vadd.f32 %v680_v57, %v475_v51 }
 0x298   :  { %v682_v59 = vpop.f32.mrf.mxu0 }
 0x299   :  { %v683_v61 = vadd.f32 %v682_v59, %v479_v52  ;;  %686 = vmax.xlane.f32.xlu0 %v685_v58 }
 0x29b   :  { %v688_v62 = vmax.f32 %v681_v60, %v683_v61 }
 0x29d   :  { %689 = vmax.xlane.f32.xlu0 %v688_v62 }
 0x322   :  { %v687_v63 = vpop.xlane.xlu0 %686 }
 0x323   :  { %v691_v0 = vsub.f32 %v677_v55, %v687_v63  ;;  %v692_v1 = vsub.f32 %v679_v56, %v687_v63 }
 0x325   :  { %v695_v2 = vmul.f32 1.442695, %v691_v0  ;;  %v697_v3 = vmul.f32 1.442695, %v692_v1 }
 0x326   :  { %v690_v4 = vpop.xlane.xlu0 %689 }
 0x327   :  { %939 = vpow2.f32 %v695_v2  ;;  %v693_v5 = vsub.f32 %v681_v60, %v690_v4  ;;  %v694_v6 = vsub.f32 %v683_v61, %v690_v4 }
 0x328   :  { %941 = vpow2.f32 %v697_v3 }
 0x329   :  { %v699_v7 = vmul.f32 1.442695, %v693_v5  ;;  %v701_v8 = vmul.f32 1.442695, %v694_v6 }
 0x32b   :  { %943 = vpow2.f32 %v699_v7 }
 0x32c   :  { %945 = vpow2.f32 %v701_v8 }
 0x334   :  { %v940_v9 = vpop.eup %939 }
 0x335   :  { %v942_v10 = vpop.eup %941 }
 0x336   :  { %v703_v11 = vadd.f32 %v942_v10, %v940_v9 }
 0x338   :  { %v944_v12 = vpop.eup %943  ;;  %704 = vadd.xlane.f32.xlu1 %v703_v11 }
 0x339   :  { %v946_v13 = vpop.eup %945 }
 0x33a   :  { %v706_v14 = vadd.f32 %v946_v13, %v944_v12 }
 0x33c   :  { %707 = vadd.xlane.f32.xlu1 %v706_v14 }
 0x3c1   :  { %v705_v15 = vpop.xlane.xlu1 %704 }
 0x3c2   :  { %947 = vrcp.f32 %v705_v15 }
 0x3c5   :  { %v708_v16 = vpop.xlane.xlu1 %707 }
 0x3c6   :  { %949 = vrcp.f32 %v708_v16 }
 0x3cf   :  { %v948_v17 = vpop.eup %947 }
 0x3d0   :  { %v710_v18 = vmul.f32 %v948_v17, %v940_v9  ;;  %v711_v19 = vmul.f32 %v948_v17, %v942_v10 }
 0x3d2   :  { %v822_v20 = vpack.c.bf16 %v711_v19, %v710_v18 }
 0x3d3   :  { %v950_v21 = vpop.eup %949 }
 0x3d4   :  { %v713_v22 = vmul.f32 %v950_v21, %v944_v12  ;;  %v714_v23 = vmul.f32 %v950_v21, %v946_v13  ;;  %727 = vst [vmem:[#allocation8] sm:$0xff] %v822_v20 }
 0x3d6   :  { %v823_v24 = vpack.c.bf16 %v714_v23, %v713_v22 }
 0x3d8   :  { %728 = vst [vmem:[#allocation8 + $0x8] sm:$0xff] %v823_v24 }
 0x3d9   :  { %1022 = shalt.err (!%p1019_p5)
}
 0x3da   :  { %740 = dma.vmem_to_hbm [thread:$0]  %s735_s22, 256, %s1130_s7, [#allocation4], %s1039_s29, %s1039_s29, %s1040_s30  }
 0x3db   :  { %1035 = dma.done.wait [#allocation4], 256  }
 0x3dc   :  { %1036 = vsyncadd [#allocation4], 4294967040 }
 0x3dd   :  { %744 = vsyncpa [#allocation3], 1 }
 0x3de   :  { %745 = vsyncpa [#allocation6], 1 }
 0x3df   :  { %746 = vsyncpa [#allocation4], 1 }

</bundles_post_ra>
